<compile_context>
chip_gen: v5e
topology: v5e:2x2
jax: 0.10.0
libtpu: 0.0.40
codegen_flags: <defaults>
</compile_context>

<pallas_src>
import numpy as np

import jax
import jax.numpy as jnp
from jax.experimental import pallas as pl
from jax.experimental.pallas import tpu as pltpu


# ----------------------------------------------------------------------------
# Fused Pallas kernel: whole GCNBlock forward for a single head (grid = heads).
# ----------------------------------------------------------------------------
def _make_gcn_block_kernel(act_flags, num_edge, n):
    """act_flags[i] == True  ->  ReLU after layer i (all but the last layer)."""
    n_layer = len(act_flags)

    def kernel(*refs):
        x_ref, bias_ref = refs[0], refs[1]
        p_refs = refs[2:2 + 5 * n_layer]
        out_ref = refs[2 + 5 * n_layer]

        h_in = x_ref[...]                                   # (N, in_dim)
        bias = bias_ref[...].astype(jnp.float32)            # (E*N, N) additive mask bias

        for li in range(n_layer):
            wf_t = p_refs[5 * li + 0][...]                  # (d_in, d_out)   pre-transposed
            bf = p_refs[5 * li + 1][...]                    # (1, d_out)
            watt = p_refs[5 * li + 2][...]                  # (E*N, d_out)    pre-flattened
            batt = p_refs[5 * li + 3][...]                  # (E*N, 1)        pre-transposed
            aw = p_refs[5 * li + 4][...]                    # (1, E)

            # filter (nn.Linear): h = x @ W^T + b   (W^T passed in)
            h = jnp.dot(h_in, wf_t, preferred_element_type=jnp.float32) + bf   # (N, d_out)

            # stacked attention logits over all edge types in one matmul:
            #   logits[e*N + k, m] = watt[e, k, :] . h[m, :] + batt[e, k]
            logits = jax.lax.dot_general(
                watt, h, (((1,), (1,)), ((), ())),
                preferred_element_type=jnp.float32) + batt                      # (E*N, N)
            logits = jax.nn.leaky_relu(logits, negative_slope=0.2)

            # neighbor-masked softmax per row (additive -1e30 bias; exp of masked
            # entries underflows to exactly 0, matching the gather/scatter softmax)
            lm = logits + bias
            lmax = jnp.max(lm, axis=-1, keepdims=True)
            e = jnp.exp(lm - lmax)
            s = jnp.maximum(jnp.sum(e, axis=-1, keepdims=True), 1e-30)  # guard empty rows
            att = e / s                                                         # (E*N, N)

            # edge-type mixture: alpha = sum_e softmax(aw)[e] * att[e]
            ew = jax.nn.softmax(aw, axis=-1)                                    # (1, E)
            alpha = jnp.zeros((n, n), jnp.float32)
            for j in range(num_edge):                       # tiny static loop
                alpha = alpha + att[j * n:(j + 1) * n, :] * ew[0:1, j:j + 1]

            # keep only neighbor (positive) entries, then softmax over nodes
            alpha = jnp.where(alpha > 0, alpha, -9e15)
            alpha = jax.nn.softmax(alpha, axis=-1)

            h = jnp.dot(alpha, h, preferred_element_type=jnp.float32)           # (N, d_out)
            if act_flags[li]:
                h = jnp.maximum(h, 0.0)                     # ReLU activation
            h_in = h

        out_ref[...] = h_in                                 # (N, out_pad) lane-dense store

    return kernel


# ----------------------------------------------------------------------------
# Wrapper: layout plumbing + single fused pallas_call.
# ----------------------------------------------------------------------------
def gcn_block_forward_pallas(x, adj, layer_params, mask):
    """x: (num_head, N, in_dim) f32; mask: (num_edge, N, N) 0/1 f32."""
    num_head, n, in_dim = x.shape
    num_edge = mask.shape[0]
    n_layer = len(layer_params)
    out_dim = layer_params[-1]["wf"].shape[1]
    out_pad = max(128, -(-out_dim // 128) * 128)            # lane-dense output width

    # additive neighbor bias (0 for neighbors, -1e30 otherwise), bf16, edge-flattened
    bias = jnp.where(mask > 0, 0.0, -1e30).astype(jnp.bfloat16).reshape(num_edge * n, n)

    inputs = [x, bias]
    in_specs = [
        pl.BlockSpec((None, n, in_dim), lambda h: (h, 0, 0)),        # x (head squeezed)
        pl.BlockSpec((num_edge * n, n), lambda h: (0, 0)),           # shared mask bias
    ]

    act_flags = []
    for li, p in enumerate(layer_params):
        wf, bf, watt, batt, aw = p["wf"], p["bf"], p["watt"], p["batt"], p["aw"]
        d_out = wf.shape[1]
        d_in = wf.shape[2]
        is_last = (li == n_layer - 1)
        act_flags.append(not is_last)

        wf_t = jnp.transpose(wf, (0, 2, 1))                               # (H, d_in, d_out)
        watt_f = watt.reshape(num_head, num_edge * n, d_out)              # (H, E*N, d_out)
        batt_t = jnp.transpose(batt, (0, 1, 3, 2)).reshape(num_head, num_edge * n, 1)

        if is_last:  # zero-pad out_dim to 128 lanes via the weights -> lane-dense store
            pad = out_pad - d_out
            wf_t = jnp.pad(wf_t, ((0, 0), (0, 0), (0, pad)))
            bf = jnp.pad(bf, ((0, 0), (0, 0), (0, pad)))
            watt_f = jnp.pad(watt_f, ((0, 0), (0, 0), (0, pad)))
            d_out = out_pad

        inputs += [wf_t, bf, watt_f, batt_t, aw]
        in_specs += [
            pl.BlockSpec((None, d_in, d_out), lambda h: (h, 0, 0)),
            pl.BlockSpec((None, 1, d_out), lambda h: (h, 0, 0)),
            pl.BlockSpec((None, num_edge * n, d_out), lambda h: (h, 0, 0)),
            pl.BlockSpec((None, num_edge * n, 1), lambda h: (h, 0, 0)),
            pl.BlockSpec((None, 1, num_edge), lambda h: (h, 0, 0)),
        ]

    kernel = _make_gcn_block_kernel(tuple(act_flags), num_edge, n)

    out_padded = pl.pallas_call(
        kernel,
        out_shape=jax.ShapeDtypeStruct((num_head, n, out_pad), jnp.float32),
        grid=(num_head,),
        in_specs=in_specs,
        out_specs=pl.BlockSpec((None, n, out_pad), lambda h: (h, 0, 0)),
        compiler_params=pltpu.CompilerParams(dimension_semantics=("parallel",)),
    )(*inputs)

    return out_padded[:, :, :out_dim], adj


# ----------------------------------------------------------------------------
# Pure-JAX reference (same math as the PyTorch module, per head / per layer).
# ----------------------------------------------------------------------------
def gcn_layer_ref(x, wf, bf, watt, batt, aw, mask, apply_act):
    num_head, n, _ = x.shape
    num_edge = mask.shape[0]
    outs = []
    for hd in range(num_head):
        h = x[hd] @ wf[hd].T + bf[hd, 0]
        ew = jax.nn.softmax(aw[hd, 0])
        alpha = jnp.zeros((n, n), jnp.float32)
        for j in range(num_edge):
            hw = jax.nn.leaky_relu(h @ watt[hd, j].T + batt[hd, j, 0], 0.2)
            lt = hw.T
            m = mask[j]
            lm = jnp.where(m > 0, lt, -1e30)
            e = jnp.exp(lm - lm.max(-1, keepdims=True)) * m
            alpha = alpha + (e / e.sum(-1, keepdims=True)) * ew[j]
        alpha = jnp.where(alpha > 0, alpha, -9e15)
        alpha = jax.nn.softmax(alpha, axis=-1)
        xh = alpha @ h
        if apply_act:
            xh = jnp.maximum(xh, 0.0)
        outs.append(xh)
    return jnp.stack(outs, axis=0)


def gcn_block_forward_ref(x, adj, layer_params, mask):
    n_layer = len(layer_params)
    out = x
    for i, p in enumerate(layer_params):
        out = gcn_layer_ref(out, p["wf"], p["bf"], p["watt"], p["batt"], p["aw"],
                            mask, apply_act=(i != n_layer - 1))
    return out, adj


# ----------------------------------------------------------------------------
# Deterministic parameter construction (matches the PyTorch initializers).
# ----------------------------------------------------------------------------
def _xavier(key, shape, fan_in, fan_out):
    limit = float(np.sqrt(6.0 / (fan_in + fan_out)))
    return jax.random.uniform(key, shape, jnp.float32, -limit, limit)


def make_layer_params(key, num_head, num_edge, n_nodes, in_dim, out_dim):
    ks = jax.random.split(key, 4)
    wf = _xavier(ks[0], (num_head, out_dim, in_dim), in_dim, out_dim)
    b_lim = 1.0 / float(np.sqrt(in_dim))
    bf = jax.random.uniform(ks[1], (num_head, 1, out_dim), jnp.float32, -b_lim, b_lim)
    watt = _xavier(ks[2], (num_head, num_edge, n_nodes, out_dim), out_dim, n_nodes)
    ab_lim = 1.0 / float(np.sqrt(out_dim))
    batt = jax.random.uniform(ks[3], (num_head, num_edge, 1, n_nodes), jnp.float32,
                              -ab_lim, ab_lim)
    aw = jnp.full((num_head, 1, num_edge), 0.1, jnp.float32)   # nn.init.constant_(0.1)
    return dict(wf=wf, bf=bf, watt=watt, batt=batt, aw=aw)


if __name__ == "__main__":
    # Hyperparameters (small, consistent with GCNBlock.__init__).
    n_layer = 2
    num_head = 2
    num_edge = 2
    N = 16                 # number of graph nodes; att layers map out_dim -> N
    in_dim = 16
    hidden_dim = 16
    out_dim = 8
    # layer0: in_dim -> hidden_dim // 2 (ReLU);  layer1: hidden_dim // 2 -> out_dim (no act)
    layer_dims = [(in_dim, hidden_dim // 2), (hidden_dim // 2, out_dim)]

    # indices_neighbor -> dense 0/1 neighbor masks (always include self-loops).
    indices_neighbor = []
    for j in range(num_edge):
        per_node = []
        for k in range(N):
            per_node.append(sorted({k, (k + j + 1) % N, (k - j - 1) % N}))
        indices_neighbor.append(per_node)

    mask_np = np.zeros((num_edge, N, N), dtype=np.float32)
    for j in range(num_edge):
        for k in range(N):
            mask_np[j, k, indices_neighbor[j][k]] = 1.0
    mask = jnp.asarray(mask_np)

    key = jax.random.PRNGKey(0)
    kx, kadj, *kparams = jax.random.split(key, 2 + n_layer)

    x = jax.random.normal(kx, (num_head, N, in_dim), jnp.float32)
    adj = (jax.random.uniform(kadj, (N, N)) > 0.5).astype(jnp.float32)  # unused pass-through

    layer_params = [
        make_layer_params(kparams[i], num_head, num_edge, N, d_in, d_out)
        for i, (d_in, d_out) in enumerate(layer_dims)
    ]

    out, adj_out = gcn_block_forward_pallas(x, adj, layer_params, mask)
    out = jax.block_until_ready(out)

    out_ref, _ = gcn_block_forward_ref(x, adj, layer_params, mask)
    out_ref = jax.block_until_ready(out_ref)

    assert out.shape == (num_head, N, out_dim)
    assert bool(jnp.all(jnp.isfinite(out)))
    np.testing.assert_allclose(np.asarray(out), np.asarray(out_ref), rtol=1e-4, atol=1e-4)

    print("KERNEL_OK")
</pallas_src>

<mosaic_0001>
module attributes {stable_mosaic.version = 11 : i64} {
  func.func @kernel(%arg0: i32, %arg1: memref<1x16x16xf32, #tpu.memory_space<vmem>>, %arg2: memref<32x16xbf16, #tpu.memory_space<vmem>>, %arg3: memref<1x16x8xf32, #tpu.memory_space<vmem>>, %arg4: memref<1x1x8xf32, #tpu.memory_space<vmem>>, %arg5: memref<1x32x8xf32, #tpu.memory_space<vmem>>, %arg6: memref<1x32x1xf32, #tpu.memory_space<vmem>>, %arg7: memref<1x1x2xf32, #tpu.memory_space<vmem>>, %arg8: memref<1x8x128xf32, #tpu.memory_space<vmem>>, %arg9: memref<1x1x128xf32, #tpu.memory_space<vmem>>, %arg10: memref<1x32x128xf32, #tpu.memory_space<vmem>>, %arg11: memref<1x32x1xf32, #tpu.memory_space<vmem>>, %arg12: memref<1x1x2xf32, #tpu.memory_space<vmem>>, %arg13: memref<1x16x128xf32, #tpu.memory_space<vmem>>) attributes {dimension_semantics = [#tpu.dimension_semantics<parallel>], iteration_bounds = array<i64: 2>, scalar_prefetch = 0 : i64, scratch_operands = 0 : i64, tpu.core_type = #tpu.core_type<tc>, window_params = [{transform_indices = @transform_0, window_bounds = array<i64: 1, 16, 16>}, {pipeline_mode = #tpu.pipeline_mode<synchronous>, transform_indices = @transform_1, window_bounds = array<i64: 32, 16>}, {transform_indices = @transform_2, window_bounds = array<i64: 1, 16, 8>}, {transform_indices = @transform_3, window_bounds = array<i64: 1, 1, 8>}, {transform_indices = @transform_4, window_bounds = array<i64: 1, 32, 8>}, {transform_indices = @transform_5, window_bounds = array<i64: 1, 32, 1>}, {transform_indices = @transform_6, window_bounds = array<i64: 1, 1, 2>}, {transform_indices = @transform_7, window_bounds = array<i64: 1, 8, 128>}, {transform_indices = @transform_8, window_bounds = array<i64: 1, 1, 128>}, {transform_indices = @transform_9, window_bounds = array<i64: 1, 32, 128>}, {transform_indices = @transform_10, window_bounds = array<i64: 1, 32, 1>}, {transform_indices = @transform_11, window_bounds = array<i64: 1, 1, 2>}, {transform_indices = @transform_12, window_bounds = array<i64: 1, 16, 128>}]} {
    %c0 = arith.constant 0 : index
    %c0_0 = arith.constant 0 : index
    %c0_1 = arith.constant 0 : index
    %0 = vector.load %arg1[%c0, %c0_0, %c0_1] : memref<1x16x16xf32, #tpu.memory_space<vmem>>, vector<1x16x16xf32>
    %1 = vector.shape_cast %0 : vector<1x16x16xf32> to vector<16x16xf32>
    %c0_2 = arith.constant 0 : index
    %c0_3 = arith.constant 0 : index
    %2 = vector.load %arg2[%c0_2, %c0_3] : memref<32x16xbf16, #tpu.memory_space<vmem>>, vector<32x16xbf16>
    %3 = arith.extf %2 : vector<32x16xbf16> to vector<32x16xf32>
    %c0_4 = arith.constant 0 : index
    %c0_5 = arith.constant 0 : index
    %c0_6 = arith.constant 0 : index
    %4 = vector.load %arg3[%c0_4, %c0_5, %c0_6] : memref<1x16x8xf32, #tpu.memory_space<vmem>>, vector<1x16x8xf32>
    %5 = vector.shape_cast %4 : vector<1x16x8xf32> to vector<16x8xf32>
    %c0_7 = arith.constant 0 : index
    %c0_8 = arith.constant 0 : index
    %c0_9 = arith.constant 0 : index
    %6 = vector.load %arg4[%c0_7, %c0_8, %c0_9] : memref<1x1x8xf32, #tpu.memory_space<vmem>>, vector<1x1x8xf32>
    %7 = vector.shape_cast %6 : vector<1x1x8xf32> to vector<1x8xf32>
    %c0_10 = arith.constant 0 : index
    %c0_11 = arith.constant 0 : index
    %c0_12 = arith.constant 0 : index
    %8 = vector.load %arg5[%c0_10, %c0_11, %c0_12] : memref<1x32x8xf32, #tpu.memory_space<vmem>>, vector<1x32x8xf32>
    %9 = vector.shape_cast %8 : vector<1x32x8xf32> to vector<32x8xf32>
    %c0_13 = arith.constant 0 : index
    %c0_14 = arith.constant 0 : index
    %c0_15 = arith.constant 0 : index
    %10 = vector.load %arg6[%c0_13, %c0_14, %c0_15] : memref<1x32x1xf32, #tpu.memory_space<vmem>>, vector<1x32x1xf32>
    %11 = vector.shape_cast %10 : vector<1x32x1xf32> to vector<32x1xf32>
    %c0_16 = arith.constant 0 : index
    %c0_17 = arith.constant 0 : index
    %c0_18 = arith.constant 0 : index
    %12 = vector.load %arg7[%c0_16, %c0_17, %c0_18] : memref<1x1x2xf32, #tpu.memory_space<vmem>>, vector<1x1x2xf32>
    %13 = vector.shape_cast %12 : vector<1x1x2xf32> to vector<1x2xf32>
    %cst = arith.constant dense<0.000000e+00> : vector<16x8xf32>
    %14 = tpu.matmul %1, %5, %cst {dimension_numbers = #tpu.dot_dimension_numbers<[1], [0], [0], [1], [0, 0, 1, 1], [], []>} : vector<16x16xf32>, vector<16x8xf32>, vector<16x8xf32> -> vector<16x8xf32>
    %15 = vector.broadcast %7 : vector<1x8xf32> to vector<16x8xf32>
    %16 = arith.addf %14, %15 : vector<16x8xf32>
    %cst_19 = arith.constant dense<0.000000e+00> : vector<32x16xf32>
    %17 = tpu.matmul %9, %16, %cst_19 {dimension_numbers = #tpu.dot_dimension_numbers<[1], [1], [0], [0], [0, 0, 1, 0], [], []>} : vector<32x8xf32>, vector<16x8xf32>, vector<32x16xf32> -> vector<32x16xf32>
    %18 = vector.broadcast %11 : vector<32x1xf32> to vector<32x16xf32>
    %19 = arith.addf %17, %18 : vector<32x16xf32>
    %cst_20 = arith.constant 2.000000e-01 : f32
    %cst_21 = arith.constant 0.000000e+00 : f32
    %20 = vector.broadcast %cst_21 : f32 to vector<32x16xf32>
    %21 = arith.cmpf oge, %19, %20 : vector<32x16xf32>
    %22 = vector.broadcast %cst_20 : f32 to vector<32x16xf32>
    %23 = arith.mulf %22, %19 : vector<32x16xf32>
    %24 = arith.select %21, %19, %23 : vector<32x16xi1>, vector<32x16xf32>
    %25 = arith.addf %24, %3 : vector<32x16xf32>
    %cst_22 = arith.constant dense<0xFF800000> : vector<32xf32>
    %26 = vector.multi_reduction <maximumf>, %25, %cst_22 [1] : vector<32x16xf32> to vector<32xf32>
    %27 = vector.shape_cast %26 : vector<32xf32> to vector<32x1xf32>
    %28 = vector.broadcast %27 : vector<32x1xf32> to vector<32x16xf32>
    %29 = arith.subf %25, %28 : vector<32x16xf32>
    %30 = math.exp %29 : vector<32x16xf32>
    %cst_23 = arith.constant dense<0.000000e+00> : vector<32xf32>
    %31 = vector.multi_reduction <add>, %30, %cst_23 [1] : vector<32x16xf32> to vector<32xf32>
    %32 = vector.shape_cast %31 : vector<32xf32> to vector<32x1xf32>
    %cst_24 = arith.constant 1.000000e-30 : f32
    %33 = vector.broadcast %cst_24 : f32 to vector<32x1xf32>
    %34 = arith.maximumf %32, %33 : vector<32x1xf32>
    %35 = vector.broadcast %34 : vector<32x1xf32> to vector<32x16xf32>
    %36 = arith.divf %30, %35 : vector<32x16xf32>
    %cst_25 = arith.constant dense<0xFF800000> : vector<1xf32>
    %37 = vector.multi_reduction <maximumf>, %13, %cst_25 [1] : vector<1x2xf32> to vector<1xf32>
    %cst_26 = arith.constant 0xFF800000 : f32
    %38 = vector.broadcast %cst_26 : f32 to vector<1xf32>
    %39 = arith.maximumf %38, %37 : vector<1xf32>
    %40 = vector.shape_cast %39 : vector<1xf32> to vector<1x1xf32>
    %41 = vector.broadcast %40 : vector<1x1xf32> to vector<1x2xf32>
    %42 = arith.subf %13, %41 : vector<1x2xf32>
    %43 = math.exp %42 : vector<1x2xf32>
    %cst_27 = arith.constant dense<0.000000e+00> : vector<1xf32>
    %44 = vector.multi_reduction <add>, %43, %cst_27 [1] : vector<1x2xf32> to vector<1xf32>
    %45 = vector.shape_cast %44 : vector<1xf32> to vector<1x1xf32>
    %46 = vector.broadcast %45 : vector<1x1xf32> to vector<1x2xf32>
    %47 = arith.divf %43, %46 : vector<1x2xf32>
    %cst_28 = arith.constant 0.000000e+00 : f32
    %48 = vector.broadcast %cst_28 : f32 to vector<16x16xf32>
    %49 = vector.extract_strided_slice %36 {offsets = [0, 0], sizes = [16, 16], strides = [1, 1]} : vector<32x16xf32> to vector<16x16xf32>
    %50 = vector.extract_strided_slice %47 {offsets = [0, 0], sizes = [1, 1], strides = [1, 1]} : vector<1x2xf32> to vector<1x1xf32>
    %51 = vector.broadcast %50 : vector<1x1xf32> to vector<16x16xf32>
    %52 = arith.mulf %49, %51 : vector<16x16xf32>
    %53 = arith.addf %48, %52 : vector<16x16xf32>
    %54 = vector.extract_strided_slice %36 {offsets = [16, 0], sizes = [16, 16], strides = [1, 1]} : vector<32x16xf32> to vector<16x16xf32>
    %55 = vector.extract_strided_slice %47 {offsets = [0, 1], sizes = [1, 1], strides = [1, 1]} : vector<1x2xf32> to vector<1x1xf32>
    %56 = vector.broadcast %55 : vector<1x1xf32> to vector<16x16xf32>
    %57 = arith.mulf %54, %56 : vector<16x16xf32>
    %58 = arith.addf %53, %57 : vector<16x16xf32>
    %cst_29 = arith.constant 0.000000e+00 : f32
    %59 = vector.broadcast %cst_29 : f32 to vector<16x16xf32>
    %60 = arith.cmpf ogt, %58, %59 : vector<16x16xf32>
    %cst_30 = arith.constant -9.000000e+15 : f32
    %61 = vector.broadcast %cst_30 : f32 to vector<16x16xf32>
    %62 = arith.select %60, %58, %61 : vector<16x16xi1>, vector<16x16xf32>
    %cst_31 = arith.constant dense<0xFF800000> : vector<16xf32>
    %63 = vector.multi_reduction <maximumf>, %62, %cst_31 [1] : vector<16x16xf32> to vector<16xf32>
    %cst_32 = arith.constant 0xFF800000 : f32
    %64 = vector.broadcast %cst_32 : f32 to vector<16xf32>
    %65 = arith.maximumf %64, %63 : vector<16xf32>
    %66 = vector.shape_cast %65 : vector<16xf32> to vector<16x1xf32>
    %67 = vector.broadcast %66 : vector<16x1xf32> to vector<16x16xf32>
    %68 = arith.subf %62, %67 : vector<16x16xf32>
    %69 = math.exp %68 : vector<16x16xf32>
    %cst_33 = arith.constant dense<0.000000e+00> : vector<16xf32>
    %70 = vector.multi_reduction <add>, %69, %cst_33 [1] : vector<16x16xf32> to vector<16xf32>
    %71 = vector.shape_cast %70 : vector<16xf32> to vector<16x1xf32>
    %72 = vector.broadcast %71 : vector<16x1xf32> to vector<16x16xf32>
    %73 = arith.divf %69, %72 : vector<16x16xf32>
    %cst_34 = arith.constant dense<0.000000e+00> : vector<16x8xf32>
    %74 = tpu.matmul %73, %16, %cst_34 {dimension_numbers = #tpu.dot_dimension_numbers<[1], [0], [0], [1], [0, 0, 1, 1], [], []>} : vector<16x16xf32>, vector<16x8xf32>, vector<16x8xf32> -> vector<16x8xf32>
    %cst_35 = arith.constant 0.000000e+00 : f32
    %75 = vector.broadcast %cst_35 : f32 to vector<16x8xf32>
    %76 = arith.maximumf %74, %75 : vector<16x8xf32>
    %c0_36 = arith.constant 0 : index
    %c0_37 = arith.constant 0 : index
    %c0_38 = arith.constant 0 : index
    %77 = vector.load %arg8[%c0_36, %c0_37, %c0_38] : memref<1x8x128xf32, #tpu.memory_space<vmem>>, vector<1x8x128xf32>
    %78 = vector.shape_cast %77 : vector<1x8x128xf32> to vector<8x128xf32>
    %c0_39 = arith.constant 0 : index
    %c0_40 = arith.constant 0 : index
    %c0_41 = arith.constant 0 : index
    %79 = vector.load %arg9[%c0_39, %c0_40, %c0_41] : memref<1x1x128xf32, #tpu.memory_space<vmem>>, vector<1x1x128xf32>
    %80 = vector.shape_cast %79 : vector<1x1x128xf32> to vector<1x128xf32>
    %c0_42 = arith.constant 0 : index
    %c0_43 = arith.constant 0 : index
    %c0_44 = arith.constant 0 : index
    %81 = vector.load %arg10[%c0_42, %c0_43, %c0_44] : memref<1x32x128xf32, #tpu.memory_space<vmem>>, vector<1x32x128xf32>
    %82 = vector.shape_cast %81 : vector<1x32x128xf32> to vector<32x128xf32>
    %c0_45 = arith.constant 0 : index
    %c0_46 = arith.constant 0 : index
    %c0_47 = arith.constant 0 : index
    %83 = vector.load %arg11[%c0_45, %c0_46, %c0_47] : memref<1x32x1xf32, #tpu.memory_space<vmem>>, vector<1x32x1xf32>
    %84 = vector.shape_cast %83 : vector<1x32x1xf32> to vector<32x1xf32>
    %c0_48 = arith.constant 0 : index
    %c0_49 = arith.constant 0 : index
    %c0_50 = arith.constant 0 : index
    %85 = vector.load %arg12[%c0_48, %c0_49, %c0_50] : memref<1x1x2xf32, #tpu.memory_space<vmem>>, vector<1x1x2xf32>
    %86 = vector.shape_cast %85 : vector<1x1x2xf32> to vector<1x2xf32>
    %cst_51 = arith.constant dense<0.000000e+00> : vector<16x128xf32>
    %87 = tpu.matmul %76, %78, %cst_51 {dimension_numbers = #tpu.dot_dimension_numbers<[1], [0], [0], [1], [0, 0, 1, 1], [], []>} : vector<16x8xf32>, vector<8x128xf32>, vector<16x128xf32> -> vector<16x128xf32>
    %88 = vector.broadcast %80 : vector<1x128xf32> to vector<16x128xf32>
    %89 = arith.addf %87, %88 : vector<16x128xf32>
    %cst_52 = arith.constant dense<0.000000e+00> : vector<32x16xf32>
    %90 = tpu.matmul %82, %89, %cst_52 {dimension_numbers = #tpu.dot_dimension_numbers<[1], [1], [0], [0], [0, 0, 1, 0], [], []>} : vector<32x128xf32>, vector<16x128xf32>, vector<32x16xf32> -> vector<32x16xf32>
    %91 = vector.broadcast %84 : vector<32x1xf32> to vector<32x16xf32>
    %92 = arith.addf %90, %91 : vector<32x16xf32>
    %cst_53 = arith.constant 2.000000e-01 : f32
    %cst_54 = arith.constant 0.000000e+00 : f32
    %93 = vector.broadcast %cst_54 : f32 to vector<32x16xf32>
    %94 = arith.cmpf oge, %92, %93 : vector<32x16xf32>
    %95 = vector.broadcast %cst_53 : f32 to vector<32x16xf32>
    %96 = arith.mulf %95, %92 : vector<32x16xf32>
    %97 = arith.select %94, %92, %96 : vector<32x16xi1>, vector<32x16xf32>
    %98 = arith.addf %97, %3 : vector<32x16xf32>
    %cst_55 = arith.constant dense<0xFF800000> : vector<32xf32>
    %99 = vector.multi_reduction <maximumf>, %98, %cst_55 [1] : vector<32x16xf32> to vector<32xf32>
    %100 = vector.shape_cast %99 : vector<32xf32> to vector<32x1xf32>
    %101 = vector.broadcast %100 : vector<32x1xf32> to vector<32x16xf32>
    %102 = arith.subf %98, %101 : vector<32x16xf32>
    %103 = math.exp %102 : vector<32x16xf32>
    %cst_56 = arith.constant dense<0.000000e+00> : vector<32xf32>
    %104 = vector.multi_reduction <add>, %103, %cst_56 [1] : vector<32x16xf32> to vector<32xf32>
    %105 = vector.shape_cast %104 : vector<32xf32> to vector<32x1xf32>
    %cst_57 = arith.constant 1.000000e-30 : f32
    %106 = vector.broadcast %cst_57 : f32 to vector<32x1xf32>
    %107 = arith.maximumf %105, %106 : vector<32x1xf32>
    %108 = vector.broadcast %107 : vector<32x1xf32> to vector<32x16xf32>
    %109 = arith.divf %103, %108 : vector<32x16xf32>
    %cst_58 = arith.constant dense<0xFF800000> : vector<1xf32>
    %110 = vector.multi_reduction <maximumf>, %86, %cst_58 [1] : vector<1x2xf32> to vector<1xf32>
    %cst_59 = arith.constant 0xFF800000 : f32
    %111 = vector.broadcast %cst_59 : f32 to vector<1xf32>
    %112 = arith.maximumf %111, %110 : vector<1xf32>
    %113 = vector.shape_cast %112 : vector<1xf32> to vector<1x1xf32>
    %114 = vector.broadcast %113 : vector<1x1xf32> to vector<1x2xf32>
    %115 = arith.subf %86, %114 : vector<1x2xf32>
    %116 = math.exp %115 : vector<1x2xf32>
    %cst_60 = arith.constant dense<0.000000e+00> : vector<1xf32>
    %117 = vector.multi_reduction <add>, %116, %cst_60 [1] : vector<1x2xf32> to vector<1xf32>
    %118 = vector.shape_cast %117 : vector<1xf32> to vector<1x1xf32>
    %119 = vector.broadcast %118 : vector<1x1xf32> to vector<1x2xf32>
    %120 = arith.divf %116, %119 : vector<1x2xf32>
    %cst_61 = arith.constant 0.000000e+00 : f32
    %121 = vector.broadcast %cst_61 : f32 to vector<16x16xf32>
    %122 = vector.extract_strided_slice %109 {offsets = [0, 0], sizes = [16, 16], strides = [1, 1]} : vector<32x16xf32> to vector<16x16xf32>
    %123 = vector.extract_strided_slice %120 {offsets = [0, 0], sizes = [1, 1], strides = [1, 1]} : vector<1x2xf32> to vector<1x1xf32>
    %124 = vector.broadcast %123 : vector<1x1xf32> to vector<16x16xf32>
    %125 = arith.mulf %122, %124 : vector<16x16xf32>
    %126 = arith.addf %121, %125 : vector<16x16xf32>
    %127 = vector.extract_strided_slice %109 {offsets = [16, 0], sizes = [16, 16], strides = [1, 1]} : vector<32x16xf32> to vector<16x16xf32>
    %128 = vector.extract_strided_slice %120 {offsets = [0, 1], sizes = [1, 1], strides = [1, 1]} : vector<1x2xf32> to vector<1x1xf32>
    %129 = vector.broadcast %128 : vector<1x1xf32> to vector<16x16xf32>
    %130 = arith.mulf %127, %129 : vector<16x16xf32>
    %131 = arith.addf %126, %130 : vector<16x16xf32>
    %cst_62 = arith.constant 0.000000e+00 : f32
    %132 = vector.broadcast %cst_62 : f32 to vector<16x16xf32>
    %133 = arith.cmpf ogt, %131, %132 : vector<16x16xf32>
    %cst_63 = arith.constant -9.000000e+15 : f32
    %134 = vector.broadcast %cst_63 : f32 to vector<16x16xf32>
    %135 = arith.select %133, %131, %134 : vector<16x16xi1>, vector<16x16xf32>
    %cst_64 = arith.constant dense<0xFF800000> : vector<16xf32>
    %136 = vector.multi_reduction <maximumf>, %135, %cst_64 [1] : vector<16x16xf32> to vector<16xf32>
    %cst_65 = arith.constant 0xFF800000 : f32
    %137 = vector.broadcast %cst_65 : f32 to vector<16xf32>
    %138 = arith.maximumf %137, %136 : vector<16xf32>
    %139 = vector.shape_cast %138 : vector<16xf32> to vector<16x1xf32>
    %140 = vector.broadcast %139 : vector<16x1xf32> to vector<16x16xf32>
    %141 = arith.subf %135, %140 : vector<16x16xf32>
    %142 = math.exp %141 : vector<16x16xf32>
    %cst_66 = arith.constant dense<0.000000e+00> : vector<16xf32>
    %143 = vector.multi_reduction <add>, %142, %cst_66 [1] : vector<16x16xf32> to vector<16xf32>
    %144 = vector.shape_cast %143 : vector<16xf32> to vector<16x1xf32>
    %145 = vector.broadcast %144 : vector<16x1xf32> to vector<16x16xf32>
    %146 = arith.divf %142, %145 : vector<16x16xf32>
    %cst_67 = arith.constant dense<0.000000e+00> : vector<16x128xf32>
    %147 = tpu.matmul %146, %89, %cst_67 {dimension_numbers = #tpu.dot_dimension_numbers<[1], [0], [0], [1], [0, 0, 1, 1], [], []>} : vector<16x16xf32>, vector<16x128xf32>, vector<16x128xf32> -> vector<16x128xf32>
    %c0_68 = arith.constant 0 : index
    %c0_69 = arith.constant 0 : index
    %c0_70 = arith.constant 0 : index
    %148 = vector.load %arg13[%c0_68, %c0_69, %c0_70] : memref<1x16x128xf32, #tpu.memory_space<vmem>>, vector<1x16x128xf32>
    %149 = vector.shape_cast %148 : vector<1x16x128xf32> to vector<16x128xf32>
    %150 = vector.shape_cast %147 : vector<16x128xf32> to vector<1x16x128xf32>
    tpu.vector_store %arg13[%c0_68, %c0_69, %c0_70], %150 {strides = array<i32>} : memref<1x16x128xf32, #tpu.memory_space<vmem>>, vector<1x16x128xf32>,
    return
  }
  func.func @transform_0(%arg0: i32) -> (i32, i32, i32) {
    %c0_i32 = arith.constant 0 : i32
    %c0_i32_0 = arith.constant 0 : i32
    %c0_i32_1 = arith.constant 0 : i32
    return %arg0, %c0_i32, %c0_i32_0 : i32, i32, i32
  }
  func.func @transform_1(%arg0: i32) -> (i32, i32) {
    %c0_i32 = arith.constant 0 : i32
    %c0_i32_0 = arith.constant 0 : i32
    %c0_i32_1 = arith.constant 0 : i32
    return %c0_i32, %c0_i32_0 : i32, i32
  }
  func.func @transform_2(%arg0: i32) -> (i32, i32, i32) {
    %c0_i32 = arith.constant 0 : i32
    %c0_i32_0 = arith.constant 0 : i32
    %c0_i32_1 = arith.constant 0 : i32
    return %arg0, %c0_i32, %c0_i32_0 : i32, i32, i32
  }
  func.func @transform_3(%arg0: i32) -> (i32, i32, i32) {
    %c0_i32 = arith.constant 0 : i32
    %c0_i32_0 = arith.constant 0 : i32
    %c0_i32_1 = arith.constant 0 : i32
    return %arg0, %c0_i32, %c0_i32_0 : i32, i32, i32
  }
  func.func @transform_4(%arg0: i32) -> (i32, i32, i32) {
    %c0_i32 = arith.constant 0 : i32
    %c0_i32_0 = arith.constant 0 : i32
    %c0_i32_1 = arith.constant 0 : i32
    return %arg0, %c0_i32, %c0_i32_0 : i32, i32, i32
  }
  func.func @transform_5(%arg0: i32) -> (i32, i32, i32) {
    %c0_i32 = arith.constant 0 : i32
    %c0_i32_0 = arith.constant 0 : i32
    %c0_i32_1 = arith.constant 0 : i32
    return %arg0, %c0_i32, %c0_i32_0 : i32, i32, i32
  }
  func.func @transform_6(%arg0: i32) -> (i32, i32, i32) {
    %c0_i32 = arith.constant 0 : i32
    %c0_i32_0 = arith.constant 0 : i32
    %c0_i32_1 = arith.constant 0 : i32
    return %arg0, %c0_i32, %c0_i32_0 : i32, i32, i32
  }
  func.func @transform_7(%arg0: i32) -> (i32, i32, i32) {
    %c0_i32 = arith.constant 0 : i32
    %c0_i32_0 = arith.constant 0 : i32
    %c0_i32_1 = arith.constant 0 : i32
    return %arg0, %c0_i32, %c0_i32_0 : i32, i32, i32
  }
  func.func @transform_8(%arg0: i32) -> (i32, i32, i32) {
    %c0_i32 = arith.constant 0 : i32
    %c0_i32_0 = arith.constant 0 : i32
    %c0_i32_1 = arith.constant 0 : i32
    return %arg0, %c0_i32, %c0_i32_0 : i32, i32, i32
  }
  func.func @transform_9(%arg0: i32) -> (i32, i32, i32) {
    %c0_i32 = arith.constant 0 : i32
    %c0_i32_0 = arith.constant 0 : i32
    %c0_i32_1 = arith.constant 0 : i32
    return %arg0, %c0_i32, %c0_i32_0 : i32, i32, i32
  }
  func.func @transform_10(%arg0: i32) -> (i32, i32, i32) {
    %c0_i32 = arith.constant 0 : i32
    %c0_i32_0 = arith.constant 0 : i32
    %c0_i32_1 = arith.constant 0 : i32
    return %arg0, %c0_i32, %c0_i32_0 : i32, i32, i32
  }
  func.func @transform_11(%arg0: i32) -> (i32, i32, i32) {
    %c0_i32 = arith.constant 0 : i32
    %c0_i32_0 = arith.constant 0 : i32
    %c0_i32_1 = arith.constant 0 : i32
    return %arg0, %c0_i32, %c0_i32_0 : i32, i32, i32
  }
  func.func @transform_12(%arg0: i32) -> (i32, i32, i32) {
    %c0_i32 = arith.constant 0 : i32
    %c0_i32_0 = arith.constant 0 : i32
    %c0_i32_1 = arith.constant 0 : i32
    return %arg0, %c0_i32, %c0_i32_0 : i32, i32, i32
  }
}

</mosaic_0001>

<bundles_post_ra>
// kernel: tpu_custom_call.1
= control target key start
LH: loop header
LB: loop body
LE: loop exit
PB: predicated region body
PF: predicated region fallthrough
CT: control target
= control target key end

     0   :  { %s2022_s0 = inlined_call_operand.vmem [shape: f32[2,16,16], index: 0, kind: input, shape index: {}]   ;;  %s2023_s1 = inlined_call_operand.vmem [shape: bf16[32,16], index: 1, kind: input, shape index: {}]   ;;  %s2024_s2 = inlined_call_operand.vmem [shape: f32[2,16,8], index: 2, kind: input, shape index: {}]   ;;  %s2025_s3 = inlined_call_operand.vmem [shape: f32[2,1,8], index: 3, kind: input, shape index: {}]   ;;  %s2026_s4 = inlined_call_operand.vmem [shape: f32[2,32,8], index: 4, kind: input, shape index: {}]   ;;  %s2027_s5 = inlined_call_operand.vmem [shape: f32[2,32,1], index: 5, kind: input, shape index: {}]   ;;  %s2028_s6 = inlined_call_operand.vmem [shape: f32[2,1,2], index: 6, kind: input, shape index: {}]   ;;  %s2029_s7 = inlined_call_operand.vmem [shape: f32[2,8,128], index: 7, kind: input, shape index: {}]   ;;  %s2030_s8 = inlined_call_operand.vmem [shape: f32[2,1,128], index: 8, kind: input, shape index: {}]   ;;  %s2031_s9 = inlined_call_operand.vmem [shape: f32[2,32,128], index: 9, kind: input, shape index: {}]   ;;  %s2032_s10 = inlined_call_operand.vmem [shape: f32[2,32,1], index: 10, kind: input, shape index: {}]   ;;  %s2033_s11 = inlined_call_operand.vmem [shape: f32[2,1,2], index: 11, kind: input, shape index: {}]   ;;  %s2034_s12 = inlined_call_operand.hbm [shape: f32[2,16,128], index: 12, kind: output, shape index: {}]  }
   0x1   :  { %2036 = sst [smem:[#allocation7_spill]] %s2022_s0 }
   0x2   :  { %2037 = sst [smem:[#allocation8_spill]] %s2023_s1 }
   0x3   :  { %17 = vsyncpa [#allocation3], 0 }
   0x4   :  { %19 = vsyncpa [#allocation3 + $0x1], 0  ;;  %s1763_s21 = smov 0   ;;  %s1765_s22 = smov 0  }
   0x5   :  { %s1767_s23 = smov 0   ;;  %s1769_s24 = smov 0  }
   0x6 LB: > { %2038 = sst [smem:[#allocation5_spill]] %s1688_s23  ;;  %s1784_s25 = sadd.s32 4294967295, %s1692_s24   ;;  %s1692_s24 = sphi %s1769_s24, %s2054_s24   ;;  %s1688_s23 = sphi %s1767_s23, %s2051_s23   ;;  %s1684_s22 = sphi %s1765_s22, %s2053_s22   ;;  %s1680_s21 = sphi %s1763_s21, %s2052_s21  }
   0x7   : > { %s1469_s26 = sadd.s32 4294967294, %s1692_s24   ;;  %s1788_s27 = sadd.s32 1, %s1692_s24  }
   0x8   : > { %s339_s28 = sadd.s32 1, %s1688_s23  ;;  %s336_s29 = ssub.s32 %s1692_s24, %s1788_s27 }
   0x9   : > { %p349_p0 = scmp.ne.s32.totalorder %s1688_s23, %s1684_s22  ;;  %p337_p1 = scmp.eq.s32.totalorder %s336_s29, 0 }
   0xa   : > { %p350_p2 = scmp.eq.s32.totalorder %s1784_s25, 1  ;;  %p355_p3 = scmp.ne.s32.totalorder %s1684_s22, %s1680_s21 }
   0xb   : > { %p356_p4 = scmp.eq.s32.totalorder %s1469_s26, 1  ;;  %p1472_p7 = scmp.ge.s32.totalorder %s1692_s24, 1 }
   0xc   : > { %s1799_s30 = scalar_select %p337_p1, %s1688_s23, %s339_s28  }
   0xd   : > { %p1801_p5 = por %p350_p2, %p349_p0  ;;  %p1805_p6 = por %p356_p4, %p355_p3 }
   0xe   : > { %2039 = sst [smem:[#allocation6_spill]] %s1799_s30  ;;  %p456_p8 = scmp.lt.s32.totalorder %s1692_s24, 3 }
  0x10   : > { %p457_p9 = pnand %p1472_p7, %p456_p8 }
  0x11   : > { %p539_p10 = scmp.lt.s32.totalorder (!%p457_p9), %s1784_s25, 1  ;;  %s2042_s0 = sld [smem:[#allocation7_spill]] (!%p457_p9) }
  0x12   : > { %460 = sbr.rel (%p457_p9) target bundleno = 1977 (0x7b9), region = 68  ;;  %s2043_s1 = sld [smem:[#allocation8_spill]] (!%p457_p9) }
  0x17   : > { %s1813_s15 = scalar_select %p539_p10, %s1784_s25, 1  ;;  %vm610_vm0 = vcmask 130048   ;;  %v1694_v5 = vmov 0   ;;  %vm660_vm1 = vcmask 64512   ;;  %vm824_vm2 = vcmask 8192  }
  0x18   : > { %1565 = vset.pattern.permute.xlu0 %v1694_v5  ;;  %1566 = vset.pattern.permute.xlu1 %v1694_v5  ;;  %v1856_v20 = vld [vmem:[%s2043_s1] sm:$0xff]   ;;  %v1868_v36 = vld [vmem:[%s2043_s1 + $0x8] sm:$0xff]   ;;  %s1650_s1 = scalar_lea.hbm %s2034_s12, 32 }
  0x19   : > { %s1506_s16 = sshll.u32 %s1813_s15, 4  ;;  %s551_s19 = scalar_lea.vmem %s2025_s3, %s1813_s15  ;;  %1569 = vset.pattern.permute.xlu2 %v1694_v5  ;;  %v1515_v24 = vunpack.c.l.bf16 %v1856_v20  ;;  %v1516_v32 = vunpack.c.h.bf16 %v1856_v20  ;;  %v1519_v41 = vunpack.c.l.bf16 %v1868_v36  ;;  %v1520_v52 = vunpack.c.h.bf16 %v1868_v36 }
  0x1a   : > { %s548_s28 = scalar_lea.vmem %s2024_s2, %s1506_s16  ;;  %s543_s23 = scalar_lea.vmem %s2042_s0, %s1506_s16  ;;  %v1572_v10 = vld [vmem:[%s551_s19] ss:$0 sm:$0xff] }
  0x1b   : > { %v596_v0 = vld [vmem:[%s548_s28 + $0x8] sm:$0xff]  ;;  %v595_v1 = vld [vmem:[%s548_s28] sm:$0xff]  ;;  %s1829_s17 = sshll.u32 %s1813_s15, 5  ;;  %s564_s26 = scalar_lea.vmem %s2028_s6, %s1813_s15 }
  0x1c   : > { %631 = vmatpush.msra.mxu0 %v596_v0  ;;  %v585_v2 = vld [vmem:[%s543_s23] sm:$0xff]  ;;  %v586_v3 = vld [vmem:[%s543_s23 + $0x8] sm:$0xff]  ;;  %s561_s30 = scalar_lea.vmem %s2027_s5, %s1829_s17  ;;  %s556_s18 = scalar_lea.vmem %s2026_s4, %s1829_s17 }
  0x1d   : > { %v602_v4 = vld [vmem:[%s561_s30] sm:$0xff]  ;;  %v603_v6 = vld [vmem:[%s561_s30 + $0x8] sm:$0xff]  ;;  %v604_v7 = vld [vmem:[%s561_s30 + $0x10] sm:$0xff]  ;;  %s1482_s16 = sshll.u32 %s1813_s15, 3  ;;  %s571_s20 = scalar_lea.vmem %s2030_s8, %s1813_s15 }
  0x1e   : > { %632 = vmatpush.msra.mxu0 %v595_v1  ;;  %642 = vperm.xlu0 %1565, %v602_v4   ;;  %v605_v9 = vld [vmem:[%s561_s30 + $0x18] sm:$0xff]  ;;  %v606_v13 = vld [vmem:[%s564_s26] sm:$0x1]  ;;  %v599_v17 = vld [vmem:[%s556_s18 + $0x8] sm:$0xff]  ;;  %s568_s29 = scalar_lea.vmem %s2029_s7, %s1482_s16  ;;  %s581_s16 = scalar_lea.vmem %s2032_s10, %s1829_s17 }
  0x1f   : > { %1487 = vmatmul.msk.f32.vlgmr.msra.gmra.mxu0 %vm610_vm0, %v585_v2  ;;  %647 = vperm.xlu1 %1566, %v603_v6   ;;  %v825_v15 = vsel %vm824_vm2, %v606_v13, -inf  ;;  %v598_v16 = vld [vmem:[%s556_s18] sm:$0xff]  ;;  %v600_v18 = vld [vmem:[%s556_s18 + $0x10] sm:$0xff]  ;;  %v601_v19 = vld [vmem:[%s556_s18 + $0x18] sm:$0xff]  ;;  %s576_s30 = scalar_lea.vmem %s2031_s9, %s1829_s17 }
  0x20   : > { %826 = vmax.xlane.f32.xlu2 %v825_v15 }
  0x26   : > { %652 = vperm.xlu0 %1565, %v604_v7  }
  0x27   : > { %1488 = vmatmul.msk.f32.gmra.mxu0 %vm610_vm0, %v586_v3  ;;  %657 = vperm.xlu1 %1566, %v605_v9   ;;  %v1695_v3 = vmov 1  }
  0x2f   : > { %1567 = vset.pattern.permute.xlu1 %v1695_v3 }
  0x90   : > { %v643_v21 = vpop.permute.xlu0 %642 }
  0x91   : > { %v648_v28 = vpop.permute.xlu1 %647 }
  0x93   : > { %v827_v42 = vpop.xlane.xlu2 %826 }
  0x94   : > { %v828_v45 = vsub.f32 %v606_v13, %v827_v42 }
  0x96   : > { %v829_v51 = vmul.f32 1.442695, %v828_v45 }
  0x98   : > { %v653_v37 = vpop.permute.xlu0 %652  ;;  %1574 = vpow2.f32 %v829_v51 }
  0x99   : > { %v658_v47 = vpop.permute.xlu1 %657 }
  0x9c   : > { %v634_v8 = vpop.f32.mrf.mxu0 }
  0x9d   : > { %v635_v14 = vadd.f32 %v1572_v10, %v634_v8 }
  0x9e   : > { %v1575_v57 = vpop.eup %1574 }
  0x9f   : > { %v831_v58 = vsel %vm824_vm2, %v1575_v57, 0.0 }
  0xa4   : > { %v637_v11 = vpop.f32.mrf.mxu0 }
  0xa5   : > { %v638_v12 = vadd.f32 %v1572_v10, %v637_v11 }
  0xa7   : > { %1489 = vmatpush.xpose.msk.msra.mxu1 %vm660_vm1, %v638_v12  ;;  %939 = vmatpush.msra.mxu2 %v638_v12 }
  0xa9   : > { %940 = vmatpush.msra.mxu2 %v635_v14 }
  0xab   : > { %1490 = vmatpush.xpose.msk.msra.mxu1 %vm660_vm1, %v635_v14 }
  0xae   : > { %1491 = vmatmul.msk.f32.vlgmr.msra.gmra.mxu1 %vm660_vm1, %v598_v16 }
  0xb6   : > { %1492 = vmatmul.msk.f32.gmra.mxu1 %vm660_vm1, %v599_v17 }
  0xbe   : > { %1493 = vmatmul.msk.f32.gmra.mxu1 %vm660_vm1, %v600_v18 }
  0xc6   : > { %1494 = vmatmul.msk.f32.gmra.mxu1 %vm660_vm1, %v601_v19 }
 0x12b   : > { %v696_v22 = vpop.f32.mrf.mxu1 }
 0x12c   : > { %v697_v23 = vadd.f32 %v696_v22, %v643_v21 }
 0x12e   : > { %vm708_vm3 = vcmp.ge.f32.partialorder %v697_v23, 0.0  ;;  %v712_v25 = vmul.f32 0.2, %v697_v23 }
 0x130   : > { %v716_v26 = vsel %vm708_vm3, %v697_v23, %v712_v25 }
 0x131   : > { %v720_v27 = vadd.f32 %v1515_v24, %v716_v26 }
 0x133   : > { %v699_v29 = vpop.f32.mrf.mxu1  ;;  %v724_v30 = vsel %vm610_vm0, %v720_v27, -inf }
 0x134   : > { %v700_v31 = vadd.f32 %v699_v29, %v648_v28  ;;  %725 = vmax.xlane.f32.xlu2 %v724_v30 }
 0x136   : > { %vm709_vm4 = vcmp.ge.f32.partialorder %v700_v31, 0.0  ;;  %v713_v33 = vmul.f32 0.2, %v700_v31 }
 0x138   : > { %v717_v34 = vsel %vm709_vm4, %v700_v31, %v713_v33 }
 0x139   : > { %v721_v35 = vadd.f32 %v1516_v32, %v717_v34 }
 0x13b   : > { %v702_v38 = vpop.f32.mrf.mxu1  ;;  %v727_v39 = vsel %vm610_vm0, %v721_v35, -inf }
 0x13c   : > { %v703_v40 = vadd.f32 %v702_v38, %v653_v37  ;;  %728 = vmax.xlane.f32.xlu1 %v727_v39 }
 0x13e   : > { %vm710_vm5 = vcmp.ge.f32.partialorder %v703_v40, 0.0  ;;  %v714_v43 = vmul.f32 0.2, %v703_v40 }
 0x140   : > { %v718_v44 = vsel %vm710_vm5, %v703_v40, %v714_v43 }
 0x141   : > { %v722_v46 = vadd.f32 %v1519_v41, %v718_v44 }
 0x143   : > { %v705_v48 = vpop.f32.mrf.mxu1  ;;  %v730_v49 = vsel %vm610_vm0, %v722_v46, -inf }
 0x144   : > { %v706_v50 = vadd.f32 %v705_v48, %v658_v47  ;;  %731 = vmax.xlane.f32.xlu0 %v730_v49 }
 0x146   : > { %vm711_vm6 = vcmp.ge.f32.partialorder %v706_v50, 0.0  ;;  %v715_v53 = vmul.f32 0.2, %v706_v50 }
 0x148   : > { %v719_v54 = vsel %vm711_vm6, %v706_v50, %v715_v53 }
 0x149   : > { %v723_v55 = vadd.f32 %v1520_v52, %v719_v54 }
 0x14b   : > { %v733_v56 = vsel %vm610_vm0, %v723_v55, -inf }
 0x14c   : > { %734 = vmax.xlane.f32.xlu2 %v733_v56 }
 0x154   : > { %832 = vadd.xlane.f32.xlu2 %v831_v58 }
 0x1a7   : > { %v726_v59 = vpop.xlane.xlu2 %725 }
 0x1a8   : > { %v736_v60 = vsub.f32 %v720_v27, %v726_v59 }
 0x1aa   : > { %v740_v61 = vmul.f32 1.442695, %v736_v60 }
 0x1ac   : > { %1576 = vpow2.f32 %v740_v61 }
 0x1af   : > { %v729_v62 = vpop.xlane.xlu1 %728 }
 0x1b0   : > { %v737_v63 = vsub.f32 %v721_v35, %v729_v62 }
 0x1b2   : > { %v1880_v0 = vpop.eup %1576  ;;  %v742_v1 = vmul.f32 1.442695, %v737_v63 }
 0x1b3   : > { %v748_v2 = vsel %vm610_vm0, %v1880_v0, 0.0 }
 0x1b4   : > { %1578 = vpow2.f32 %v742_v1  ;;  %749 = vadd.xlane.f32.xlu2 %v748_v2 }
 0x1b7   : > { %v732_v4 = vpop.xlane.xlu0 %731 }
 0x1b8   : > { %v738_v6 = vsub.f32 %v722_v46, %v732_v4 }
 0x1ba   : > { %v1885_v7 = vpop.eup %1578  ;;  %v744_v8 = vmul.f32 1.442695, %v738_v6 }
 0x1bb   : > { %v751_v9 = vsel %vm610_vm0, %v1885_v7, 0.0 }
 0x1bc   : > { %1580 = vpow2.f32 %v744_v8  ;;  %752 = vadd.xlane.f32.xlu2 %v751_v9 }
 0x1bf   : > { %v735_v10 = vpop.xlane.xlu2 %734 }
 0x1c0   : > { %v739_v11 = vsub.f32 %v723_v55, %v735_v10 }
 0x1c2   : > { %v1889_v12 = vpop.eup %1580  ;;  %v746_v13 = vmul.f32 1.442695, %v739_v11 }
 0x1c3   : > { %v754_v14 = vsel %vm610_vm0, %v1889_v12, 0.0 }
 0x1c4   : > { %1582 = vpow2.f32 %v746_v13  ;;  %755 = vadd.xlane.f32.xlu2 %v754_v14 }
 0x1c7   : > { %v833_v15 = vpop.xlane.xlu2 %832 }
 0x1c8   : > { %1584 = vrcp.f32 %v833_v15  ;;  %v845_v22 = vand.u32 2147483648, %v833_v15  ;;  %v843_v25 = vand.u32 2147483647, %v833_v15  ;;  %vm839_vm8 = vweird.f32 %v833_v15 }
 0x1ca   : > { %v1893_v16 = vpop.eup %1582  ;;  %v846_v27 = vor.u32 1.1754944e-38, %v845_v22  ;;  %vm844_vm10 = vcmp.eq.f32.partialorder %v843_v25, 8.507059e+37 }
 0x1cb   : > { %v757_v17 = vsel %vm610_vm0, %v1893_v16, 0.0 }
 0x1cc   : > { %758 = vadd.xlane.f32.xlu2 %v757_v17 }
 0x1ce   : > { %v1585_v18 = vpop.eup %1584 }
 0x1cf   : > { %v835_v19 = vmul.f32 %v1585_v18, %v833_v15  ;;  %vm840_vm7 = vweird.f32 %v1585_v18 }
 0x1d0   : > { %vm841_vm9 = vmor %vm839_vm8, %vm840_vm7 }
 0x1d1   : > { %v836_v21 = vsub.f32 1.0, %v835_v19 }
 0x1d3   : > { %v837_v23 = vmul.f32 %v1585_v18, %v836_v21 }
 0x1d5   : > { %v838_v26 = vadd.f32 %v1585_v18, %v837_v23 }
 0x1d7   : > { %v842_v28 = vsel %vm841_vm9, %v1585_v18, %v838_v26 }
 0x1d8   : > { %v847_v29 = vsel %vm844_vm10, %v846_v27, %v842_v28 }
 0x1d9   : > { %v848_v30 = vmul.f32 %v1575_v57, %v847_v29 }
 0x1db   : > { %v850_v31 = vperm.slane %v848_v30, 0 }
 0x1dd   : > { %860 = vperm.xlu1 %1567, %v850_v31   ;;  %852 = vperm.xlu0 %1565, %v850_v31  }
 0x1e5   : > { %1568 = vset.pattern.permute.xlu1 %v1694_v5 }
 0x227   : > { %v750_v33 = vpop.xlane.xlu2 %749 }
 0x228   : > { %v760_v34 = vmax.f32 %v750_v33, 1e-30 }
 0x22a   : > { %1586 = vrcp.f32 %v760_v34  ;;  %v775_v54 = vand.u32 2147483648, %v760_v34  ;;  %vm769_vm13 = vweird.f32 %v760_v34  ;;  %v773_v59 = vand.u32 2147483647, %v760_v34 }
 0x22c   : > { %v776_v1 = vor.u32 1.1754944e-38, %v775_v54  ;;  %vm774_vm6 = vcmp.eq.f32.partialorder %v773_v59, 8.507059e+37  ;;  %v950_v54 = vld [vmem:[%s568_s29] sm:$0xff]  ;;  %s584_s29 = scalar_lea.vmem %s2033_s11, %s1813_s15  ;;  %s536_s15 = sand.u32 1, %s1684_s22  }
 0x22d   : > { %985 = vmatpush.msrb.mxu2 %v950_v54  ;;  %s1473_s17 = sshll.u32 %s536_s15, 4  ;;  %s1284_s19 = scalar_lea.sflag [#allocation3], %s536_s15 }
 0x22e   : > { %s538_s23 = scalar_lea.vmem [#allocation2], %s1473_s17 }
 0x22f   : > { %v753_v35 = vpop.xlane.xlu2 %752 }
 0x230   : > { %v761_v37 = vmax.f32 %v753_v35, 1e-30  ;;  %v1587_v38 = vpop.eup %1586 }
 0x231   : > { %v765_v40 = vmul.f32 %v1587_v38, %v760_v34  ;;  %vm770_vm11 = vweird.f32 %v1587_v38 }
 0x232   : > { %1588 = vrcp.f32 %v761_v37  ;;  %vm1898_vm15 = vmor %vm769_vm13, %vm770_vm11  ;;  %vm784_vm7 = vweird.f32 %v761_v37  ;;  %v790_v9 = vand.u32 2147483648, %v761_v37  ;;  %v788_v14 = vand.u32 2147483647, %v761_v37 }
 0x233   : > { %v766_v44 = vsub.f32 1.0, %v765_v40 }
 0x234   : > { %v791_v25 = vor.u32 1.1754944e-38, %v790_v9  ;;  %vm789_vm11 = vcmp.eq.f32.partialorder %v788_v14, 8.507059e+37 }
 0x235   : > { %v767_v49 = vmul.f32 %v1587_v38, %v766_v44 }
 0x237   : > { %v756_v39 = vpop.xlane.xlu2 %755  ;;  %v768_v53 = vadd.f32 %v1587_v38, %v767_v49 }
 0x238   : > { %v762_v42 = vmax.f32 %v756_v39, 1e-30  ;;  %v1589_v43 = vpop.eup %1588 }
 0x239   : > { %v780_v45 = vmul.f32 %v1589_v43, %v761_v37  ;;  %v772_v63 = vsel %vm1898_vm15, %v1587_v38, %v768_v53  ;;  %vm785_vm4 = vweird.f32 %v1589_v43 }
 0x23a   : > { %1590 = vrcp.f32 %v762_v42  ;;  %v805_v56 = vand.u32 2147483648, %v762_v42  ;;  %v803_v58 = vand.u32 2147483647, %v762_v42  ;;  %vm799_vm14 = vweird.f32 %v762_v42  ;;  %vm1904_vm8 = vmor %vm784_vm7, %vm785_vm4 }
 0x23b   : > { %v781_v50 = vsub.f32 1.0, %v780_v45  ;;  %v777_v13 = vsel %vm774_vm6, %v776_v1, %v772_v63 }
 0x23c   : > { %v806_v6 = vor.u32 1.1754944e-38, %v805_v56  ;;  %vm804_vm5 = vcmp.eq.f32.partialorder %v803_v58, 8.507059e+37  ;;  %v778_v23 = vmul.f32 %v1880_v0, %v777_v13 }
 0x23d   : > { %v782_v57 = vmul.f32 %v1589_v43, %v781_v50 }
 0x23f   : > { %v759_v46 = vpop.xlane.xlu2 %758  ;;  %v783_v8 = vadd.f32 %v1589_v43, %v782_v57 }
 0x240   : > { %v1591_v47 = vpop.eup %1590  ;;  %v763_v48 = vmax.f32 %v759_v46, 1e-30 }
 0x241   : > { %v795_v5 = vmul.f32 %v1591_v47, %v762_v42  ;;  %vm800_vm12 = vweird.f32 %v1591_v47  ;;  %v787_v21 = vsel %vm1904_vm8, %v1589_v43, %v783_v8 }
 0x242   : > { %1592 = vrcp.f32 %v763_v48  ;;  %vm801_vm3 = vmor %vm799_vm14, %vm800_vm12  ;;  %v820_v15 = vand.u32 2147483648, %v763_v48  ;;  %v818_v19 = vand.u32 2147483647, %v763_v48  ;;  %vm814_vm10 = vweird.f32 %v763_v48 }
 0x243   : > { %v796_v51 = vsub.f32 1.0, %v795_v5  ;;  %v792_v31 = vsel %vm789_vm11, %v791_v25, %v787_v21 }
 0x244   : > { %v821_v29 = vor.u32 1.1754944e-38, %v820_v15  ;;  %vm819_vm13 = vcmp.eq.f32.partialorder %v818_v19, 8.507059e+37 }
 0x245   : > { %v797_v55 = vmul.f32 %v1591_v47, %v796_v51 }
 0x247   : > { %v798_v60 = vadd.f32 %v1591_v47, %v797_v55 }
 0x248   : > { %v1593_v62 = vpop.eup %1592 }
 0x249   : > { %v810_v2 = vmul.f32 %v1593_v62, %v763_v48  ;;  %v802_v4 = vsel %vm801_vm3, %v1591_v47, %v798_v60  ;;  %vm815_vm9 = vweird.f32 %v1593_v62 }
 0x24a   : > { %v807_v11 = vsel %vm804_vm5, %v806_v6, %v802_v4  ;;  %vm816_vm12 = vmor %vm814_vm10, %vm815_vm9 }
 0x24b   : > { %v811_v10 = vsub.f32 1.0, %v810_v2  ;;  %v808_v22 = vmul.f32 %v1889_v12, %v807_v11  ;;  %v793_v12 = vmul.f32 %v1885_v7, %v792_v31  ;;  %v1573_v31 = vld [vmem:[%s571_s20] ss:$0 sm:$0xff]  ;;  %s1512_s20 = sshll.u32 %s1784_s25, 4 }
 0x24c   : > { %s1295_s28 = scalar_lea.hbm %s2034_s12, %s1512_s20 }
 0x24d   : > { %v812_v18 = vmul.f32 %v1593_v62, %v811_v10  ;;  %s1298_s18 = sshll.u32 %s1295_s28, 4  ;;  %s1299_s18 = int_to_ptr.hbm [resolvable:$true] %s1298_s18 }
 0x24f   : > { %v861_v26 = vpop.permute.xlu1 %860  ;;  %v813_v27 = vadd.f32 %v1593_v62, %v812_v18  ;;  %v853_v28 = vpop.permute.xlu0 %852 }
 0x250   : > { %v863_v30 = vmul.f32 %v861_v26, %v808_v22  ;;  %v855_v33 = vmul.f32 %v853_v28, %v778_v23  ;;  %v856_v39 = vmul.f32 %v853_v28, %v793_v12  ;;  %v956_v22 = vld [vmem:[%s581_s16] sm:$0xff]  ;;  %v957_v23 = vld [vmem:[%s581_s16 + $0x8] sm:$0xff] }
 0x251   : > { %v817_v34 = vsel %vm816_vm12, %v1593_v62, %v813_v27  ;;  %995 = vperm.xlu1 %1568, %v956_v22  }
 0x252   : > { %v822_v35 = vsel %vm819_vm13, %v821_v29, %v817_v34  ;;  %v865_v37 = vadd.f32 %v863_v30, %v855_v33  ;;  %v959_v29 = vld [vmem:[%s581_s16 + $0x18] sm:$0xff] }
 0x253   : > { %v823_v38 = vmul.f32 %v1893_v16, %v822_v35  ;;  %v960_v35 = vld [vmem:[%s584_s29] sm:$0x1]  ;;  %s1296_s29 = sshll.u32 %s538_s23, 4  ;;  %s1297_s29 = int_to_ptr.vmem [resolvable:$true] %s1296_s29 }
 0x254   : > { %vm867_vm14 = vcmp.gt.f32.partialorder %v865_v37, 0.0  ;;  %v1158_v12 = vsel %vm824_vm2, %v960_v35, -inf }
 0x255   : > { %v864_v0 = vmul.f32 %v861_v26, %v823_v38  ;;  %v869_v40 = vsel %vm867_vm14, %v865_v37, -9e+15  ;;  %v958_v37 = vld [vmem:[%s581_s16 + $0x10] sm:$0xff] }
 0x256   : > { %v871_v42 = vsel %vm610_vm0, %v869_v40, -inf }
 0x257   : > { %872 = vmax.xlane.f32.xlu2 %v871_v42  ;;  %v866_v43 = vadd.f32 %v864_v0, %v856_v39  ;;  %v952_v0 = vld [vmem:[%s576_s30] sm:$0xff]  ;;  %v953_v39 = vld [vmem:[%s576_s30 + $0x8] sm:$0xff]  ;;  %v955_v42 = vld [vmem:[%s576_s30 + $0x18] sm:$0xff] }
 0x259   : > { %vm868_vm15 = vcmp.gt.f32.partialorder %v866_v43, 0.0  ;;  %1000 = vperm.xlu1 %1568, %v957_v23  }
 0x25a   : > { %v870_v44 = vsel %vm868_vm15, %v866_v43, -9e+15 }
 0x25b   : > { %v874_v45 = vsel %vm610_vm0, %v870_v44, -inf }
 0x25f   : > { %875 = vmax.xlane.f32.xlu2 %v874_v45 }
 0x261   : > { %1010 = vperm.xlu1 %1568, %v959_v29  }
 0x28b   : > { %1159 = vmax.xlane.f32.xlu1 %v1158_v12 }
 0x2c3   : > { %v996_v43 = vpop.permute.xlu1 %995 }
 0x2ca   : > { %v873_v46 = vpop.xlane.xlu2 %872 }
 0x2cb   : > { %v877_v47 = vsub.f32 %v869_v40, %v873_v46  ;;  %v954_v40 = vld [vmem:[%s576_s30 + $0x10] sm:$0xff]  ;;  %s1644_s30 = sshra.s32 %s1299_s18, 4  ;;  %s1645_s30 = int_to_ptr.hbm [resolvable:$true] %s1644_s30 }
 0x2cc   : > { %s1646_s0 = scalar_lea.hbm %s1645_s30, 16  ;;  %p1651_p0 = scmp.lt.s32.totalorder %s1645_s30, %s2034_s12 }
 0x2cd   : > { %v879_v48 = vmul.f32 1.442695, %v877_v47  ;;  %p1647_p11 = scmp.ne.s32.totalorder %s1645_s30, %s1646_s0  ;;  %p1652_p1 = scmp.lt.s32.totalorder %s1650_s1, %s1646_s0 }
 0x2cf   : > { %1594 = vpow2.f32 %v879_v48  ;;  %p1648_p12 = pnand %p1647_p11, %p1801_p5  ;;  %p1653_p2 = por %p1652_p1, %p1651_p0 }
 0x2d1   : > { %p1649_p13 = pneg %p1648_p12 }
 0x2d2   : > { %v876_v16 = vpop.xlane.xlu2 %875 }
 0x2d3   : > { %v878_v7 = vsub.f32 %v870_v44, %v876_v16  ;;  %v1001_v44 = vpop.permute.xlu1 %1000  ;;  %p1654_p3 = pnand %p1653_p2, %p1649_p13 }
 0x2d5   : > { %v1595_v49 = vpop.eup %1594  ;;  %v881_v50 = vmul.f32 1.442695, %v878_v7 }
 0x2d6   : > { %v883_v5 = vsel %vm610_vm0, %v1595_v49, 0.0 }
 0x2d7   : > { %1596 = vpow2.f32 %v881_v50  ;;  %884 = vadd.xlane.f32.xlu0 %v883_v5 }
 0x2db   : > { %v1011_v5 = vpop.permute.xlu1 %1010 }
 0x2dd   : > { %v1597_v51 = vpop.eup %1596 }
 0x2de   : > { %v886_v53 = vsel %vm610_vm0, %v1597_v51, 0.0 }
 0x2df   : > { %887 = vadd.xlane.f32.xlu2 %v886_v53 }
 0x2f7   : > { %1005 = vperm.xlu2 %1569, %v958_v37  }
 0x2ff   : > { %1570 = vset.pattern.permute.xlu2 %v1695_v3 }
 0x34a   : > { %v885_v55 = vpop.xlane.xlu0 %884 }
 0x34b   : > { %1598 = vrcp.f32 %v885_v55  ;;  %v900_v60 = vand.u32 2147483648, %v885_v55  ;;  %v898_v62 = vand.u32 2147483647, %v885_v55  ;;  %vm894_vm4 = vweird.f32 %v885_v55 }
 0x34d   : > { %v901_v2 = vor.u32 1.1754944e-38, %v900_v60  ;;  %vm899_vm6 = vcmp.eq.f32.partialorder %v898_v62, 8.507059e+37 }
 0x351   : > { %v1599_v56 = vpop.eup %1598 }
 0x352   : > { %v890_v57 = vmul.f32 %v1599_v56, %v885_v55  ;;  %v888_v58 = vpop.xlane.xlu2 %887  ;;  %vm895_vm3 = vweird.f32 %v1599_v56 }
 0x353   : > { %1600 = vrcp.f32 %v888_v58  ;;  %vm896_vm5 = vmor %vm894_vm4, %vm895_vm3  ;;  %v915_v11 = vand.u32 2147483648, %v888_v58  ;;  %v913_v14 = vand.u32 2147483647, %v888_v58  ;;  %vm909_vm8 = vweird.f32 %v888_v58 }
 0x354   : > { %v891_v59 = vsub.f32 1.0, %v890_v57 }
 0x355   : > { %v916_v17 = vor.u32 1.1754944e-38, %v915_v11  ;;  %vm914_vm10 = vcmp.eq.f32.partialorder %v913_v14, 8.507059e+37 }
 0x356   : > { %v892_v61 = vmul.f32 %v1599_v56, %v891_v59  ;;  %v1160_v59 = vpop.xlane.xlu1 %1159 }
 0x358   : > { %v893_v63 = vadd.f32 %v1599_v56, %v892_v61  ;;  %v1161_v61 = vsub.f32 %v960_v35, %v1160_v59 }
 0x359   : > { %v1601_v1 = vpop.eup %1600 }
 0x35a   : > { %v905_v4 = vmul.f32 %v1601_v1, %v888_v58  ;;  %v897_v6 = vsel %vm896_vm5, %v1599_v56, %v893_v63  ;;  %vm910_vm7 = vweird.f32 %v1601_v1  ;;  %v1006_v54 = vpop.permute.xlu2 %1005  ;;  %v1162_v20 = vmul.f32 1.442695, %v1161_v61 }
 0x35b   : > { %v902_v8 = vsel %vm899_vm6, %v901_v2, %v897_v6  ;;  %vm911_vm9 = vmor %vm909_vm8, %vm910_vm7 }
 0x35c   : > { %v906_v9 = vsub.f32 1.0, %v905_v4  ;;  %v903_v10 = vmul.f32 %v1595_v49, %v902_v8  ;;  %1602 = vpow2.f32 %v1162_v20 }
 0x35e   : > { %v907_v13 = vmul.f32 %v1601_v1, %v906_v9  ;;  %1495 = vmatmul.msk.f32.vlgmr.msra.gmra.mxu2 %vm610_vm0, %v903_v10 }
 0x360   : > { %v908_v15 = vadd.f32 %v1601_v1, %v907_v13 }
 0x362   : > { %v912_v18 = vsel %vm911_vm9, %v1601_v1, %v908_v15  ;;  %v1603_v9 = vpop.eup %1602 }
 0x363   : > { %v917_v19 = vsel %vm914_vm10, %v916_v17, %v912_v18  ;;  %v1164_v10 = vsel %vm824_vm2, %v1603_v9, 0.0 }
 0x364   : > { %v918_v21 = vmul.f32 %v1597_v51, %v917_v19 }
 0x366   : > { %1496 = vmatmul.msk.f32.gmra.mxu2 %vm610_vm0, %v918_v21 }
 0x3e1   : > { %v942_v25 = vpop.f32.mrf.mxu2 }
 0x3e2   : > { %v948_v26 = vmax.f32 %v942_v25, 0.0 }
 0x3e4   : > { %1497 = vmatmul.msk.f32.vlgmr.msrb.gmra.mxu2 %vm660_vm1, %v948_v26 }
 0x3e9   : > { %v945_v27 = vpop.f32.mrf.mxu2 }
 0x3ea   : > { %v949_v28 = vmax.f32 %v945_v27, 0.0 }
 0x3ec   : > { %1498 = vmatmul.msk.f32.gmra.mxu2 %vm660_vm1, %v949_v28 }
 0x467   : > { %v987_v30 = vpop.f32.mrf.mxu2 }
 0x468   : > { %v988_v38 = vadd.f32 %v1573_v31, %v987_v30 }
 0x46f   : > { %v990_v33 = vpop.f32.mrf.mxu2 }
 0x470   : > { %v991_v34 = vadd.f32 %v1573_v31, %v990_v33 }
 0x472   : > { %1027 = vmatpush.xpose.msra.mxu3 %v991_v34  ;;  %1272 = vmatpush.msrb.mxu0 %v991_v34 }
 0x474   : > { %1273 = vmatpush.msrb.mxu0 %v988_v38 }
 0x476   : > { %1028 = vmatpush.xpose.msra.mxu3 %v988_v38 }
 0x479   : > { %1029 = vmatmul.f32.vlgmr.msra.gmra.mxu3 %v952_v0 }
 0x481   : > { %1032 = vmatmul.f32.gmra.mxu3 %v953_v39 }
 0x489   : > { %1035 = vmatmul.f32.gmra.mxu3 %v954_v40 }
 0x491   : > { %1038 = vmatmul.f32.gmra.mxu3 %v955_v42 }
 0x4fc   : > { %v1030_v45 = vpop.f32.mrf.mxu3 }
 0x4fd   : > { %v1031_v46 = vadd.f32 %v1030_v45, %v996_v43 }
 0x4ff   : > { %vm1042_vm1 = vcmp.ge.f32.partialorder %v1031_v46, 0.0  ;;  %v1046_v47 = vmul.f32 0.2, %v1031_v46 }
 0x501   : > { %v1050_v48 = vsel %vm1042_vm1, %v1031_v46, %v1046_v47 }
 0x502   : > { %v1054_v16 = vadd.f32 %v1515_v24, %v1050_v48 }
 0x504   : > { %v1033_v7 = vpop.f32.mrf.mxu3  ;;  %v1058_v49 = vsel %vm610_vm0, %v1054_v16, -inf }
 0x505   : > { %v1034_v50 = vadd.f32 %v1033_v7, %v1001_v44  ;;  %1059 = vmax.xlane.f32.xlu2 %v1058_v49 }
 0x507   : > { %vm1043_vm11 = vcmp.ge.f32.partialorder %v1034_v50, 0.0  ;;  %v1047_v51 = vmul.f32 0.2, %v1034_v50 }
 0x509   : > { %v1051_v53 = vsel %vm1043_vm11, %v1034_v50, %v1047_v51 }
 0x50a   : > { %v1055_v55 = vadd.f32 %v1516_v32, %v1051_v53 }
 0x50c   : > { %v1036_v56 = vpop.f32.mrf.mxu3  ;;  %v1061_v57 = vsel %vm610_vm0, %v1055_v55, -inf }
 0x50d   : > { %v1037_v58 = vadd.f32 %v1036_v56, %v1006_v54  ;;  %1062 = vmax.xlane.f32.xlu0 %v1061_v57 }
 0x50f   : > { %vm1044_vm12 = vcmp.ge.f32.partialorder %v1037_v58, 0.0  ;;  %v1048_v24 = vmul.f32 0.2, %v1037_v58 }
 0x511   : > { %v1052_v60 = vsel %vm1044_vm12, %v1037_v58, %v1048_v24 }
 0x512   : > { %v1056_v62 = vadd.f32 %v1519_v41, %v1052_v60 }
 0x514   : > { %v1039_v63 = vpop.f32.mrf.mxu3  ;;  %v1064_v1 = vsel %vm610_vm0, %v1056_v62, -inf }
 0x515   : > { %v1040_v2 = vadd.f32 %v1039_v63, %v1011_v5  ;;  %1065 = vmax.xlane.f32.xlu0 %v1064_v1 }
 0x517   : > { %vm1045_vm13 = vcmp.ge.f32.partialorder %v1040_v2, 0.0  ;;  %v1049_v32 = vmul.f32 0.2, %v1040_v2 }
 0x519   : > { %v1053_v4 = vsel %vm1045_vm13, %v1040_v2, %v1049_v32 }
 0x51a   : > { %v1057_v6 = vadd.f32 %v1520_v52, %v1053_v4 }
 0x51c   : > { %v1067_v8 = vsel %vm610_vm0, %v1057_v6, -inf }
 0x51d   : > { %1068 = vmax.xlane.f32.xlu0 %v1067_v8 }
 0x525   : > { %1165 = vadd.xlane.f32.xlu0 %v1164_v10 }
 0x578   : > { %v1060_v41 = vpop.xlane.xlu2 %1059 }
 0x579   : > { %v1070_v11 = vsub.f32 %v1054_v16, %v1060_v41 }
 0x57b   : > { %v1074_v13 = vmul.f32 1.442695, %v1070_v11 }
 0x57d   : > { %1604 = vpow2.f32 %v1074_v13 }
 0x580   : > { %v1063_v14 = vpop.xlane.xlu0 %1062 }
 0x581   : > { %v1071_v15 = vsub.f32 %v1055_v55, %v1063_v14 }
 0x583   : > { %v1957_v17 = vpop.eup %1604  ;;  %v1076_v18 = vmul.f32 1.442695, %v1071_v15 }
 0x584   : > { %v1082_v36 = vsel %vm610_vm0, %v1957_v17, 0.0 }
 0x585   : > { %1606 = vpow2.f32 %v1076_v18  ;;  %1083 = vadd.xlane.f32.xlu1 %v1082_v36 }
 0x588   : > { %v1066_v52 = vpop.xlane.xlu0 %1065 }
 0x589   : > { %v1072_v19 = vsub.f32 %v1056_v62, %v1066_v52 }
 0x58b   : > { %v1961_v21 = vpop.eup %1606  ;;  %v1078_v22 = vmul.f32 1.442695, %v1072_v19 }
 0x58c   : > { %v1085_v23 = vsel %vm610_vm0, %v1961_v21, 0.0 }
 0x58d   : > { %1608 = vpow2.f32 %v1078_v22  ;;  %1086 = vadd.xlane.f32.xlu2 %v1085_v23 }
 0x590   : > { %v1069_v25 = vpop.xlane.xlu0 %1068 }
 0x591   : > { %v1073_v26 = vsub.f32 %v1057_v6, %v1069_v25 }
 0x593   : > { %v1965_v27 = vpop.eup %1608  ;;  %v1080_v28 = vmul.f32 1.442695, %v1073_v26 }
 0x594   : > { %v1088_v29 = vsel %vm610_vm0, %v1965_v27, 0.0 }
 0x595   : > { %1610 = vpow2.f32 %v1080_v28  ;;  %1089 = vadd.xlane.f32.xlu0 %v1088_v29 }
 0x598   : > { %v1166_v30 = vpop.xlane.xlu0 %1165 }
 0x599   : > { %1612 = vrcp.f32 %v1166_v30  ;;  %v1178_v38 = vand.u32 2147483648, %v1166_v30  ;;  %v1176_v0 = vand.u32 2147483647, %v1166_v30  ;;  %vm1172_vm14 = vweird.f32 %v1166_v30 }
 0x59b   : > { %v1969_v31 = vpop.eup %1610  ;;  %v1179_v40 = vor.u32 1.1754944e-38, %v1178_v38  ;;  %vm1177_vm3 = vcmp.eq.f32.partialorder %v1176_v0, 8.507059e+37 }
 0x59c   : > { %v1091_v33 = vsel %vm610_vm0, %v1969_v31, 0.0 }
 0x59d   : > { %1092 = vadd.xlane.f32.xlu1 %v1091_v33 }
 0x59f   : > { %v1613_v34 = vpop.eup %1612 }
 0x5a0   : > { %v1168_v35 = vmul.f32 %v1613_v34, %v1166_v30  ;;  %vm1173_vm2 = vweird.f32 %v1613_v34 }
 0x5a1   : > { %vm1174_vm15 = vmor %vm1172_vm14, %vm1173_vm2 }
 0x5a2   : > { %v1169_v37 = vsub.f32 1.0, %v1168_v35 }
 0x5a4   : > { %v1170_v12 = vmul.f32 %v1613_v34, %v1169_v37 }
 0x5a6   : > { %v1171_v39 = vadd.f32 %v1613_v34, %v1170_v12 }
 0x5a8   : > { %v1175_v42 = vsel %vm1174_vm15, %v1613_v34, %v1171_v39 }
 0x5a9   : > { %v1180_v43 = vsel %vm1177_vm3, %v1179_v40, %v1175_v42 }
 0x5aa   : > { %v1181_v44 = vmul.f32 %v1603_v9, %v1180_v43 }
 0x5ac   : > { %v1183_v45 = vperm.slane %v1181_v44, 0 }
 0x5ae   : > { %1193 = vperm.xlu2 %1570, %v1183_v45   ;;  %1185 = vperm.xlu0 %1565, %v1183_v45  }
 0x5b6   : > { %1571 = vset.pattern.permute.xlu0 %v1695_v3 }
 0x5f8   : > { %v1084_v46 = vpop.xlane.xlu1 %1083 }
 0x5f9   : > { %v1094_v47 = vmax.f32 %v1084_v46, 1e-30 }
 0x5fb   : > { %1614 = vrcp.f32 %v1094_v47  ;;  %v1109_v62 = vand.u32 2147483648, %v1094_v47  ;;  %vm1103_vm6 = vweird.f32 %v1094_v47  ;;  %v1107_v20 = vand.u32 2147483647, %v1094_v47 }
 0x5fd   : > { %v1110_v10 = vor.u32 1.1754944e-38, %v1109_v62  ;;  %vm1108_vm11 = vcmp.eq.f32.partialorder %v1107_v20, 8.507059e+37 }
 0x600   : > { %v1087_v48 = vpop.xlane.xlu2 %1086 }
 0x601   : > { %v1095_v16 = vmax.f32 %v1087_v48, 1e-30  ;;  %v1615_v7 = vpop.eup %1614 }
 0x602   : > { %v1099_v50 = vmul.f32 %v1615_v7, %v1094_v47  ;;  %vm1104_vm4 = vweird.f32 %v1615_v7 }
 0x603   : > { %1616 = vrcp.f32 %v1095_v16  ;;  %vm1974_vm8 = vmor %vm1103_vm6, %vm1104_vm4  ;;  %v1124_v15 = vand.u32 2147483648, %v1095_v16  ;;  %vm1118_vm12 = vweird.f32 %v1095_v16  ;;  %v1122_v52 = vand.u32 2147483647, %v1095_v16 }
 0x604   : > { %v1100_v53 = vsub.f32 1.0, %v1099_v50 }
 0x605   : > { %v1125_v29 = vor.u32 1.1754944e-38, %v1124_v15  ;;  %vm1123_vm15 = vcmp.eq.f32.partialorder %v1122_v52, 8.507059e+37 }
 0x606   : > { %v1101_v58 = vmul.f32 %v1615_v7, %v1100_v53 }
 0x608   : > { %v1090_v49 = vpop.xlane.xlu0 %1089  ;;  %v1102_v61 = vadd.f32 %v1615_v7, %v1101_v58  ;;  %v1194_v30 = vpop.permute.xlu2 %1193 }
 0x609   : > { %v1096_v5 = vmax.f32 %v1090_v49, 1e-30  ;;  %v1617_v51 = vpop.eup %1616 }
 0x60a   : > { %v1114_v54 = vmul.f32 %v1617_v51, %v1095_v16  ;;  %v1106_v9 = vsel %vm1974_vm8, %v1615_v7, %v1102_v61  ;;  %vm1119_vm10 = vweird.f32 %v1617_v51 }
 0x60b   : > { %1618 = vrcp.f32 %v1096_v5  ;;  %v1139_v60 = vand.u32 2147483648, %v1096_v5  ;;  %v1137_v1 = vand.u32 2147483647, %v1096_v5  ;;  %vm1133_vm7 = vweird.f32 %v1096_v5  ;;  %vm1120_vm13 = vmor %vm1118_vm12, %vm1119_vm10 }
 0x60c   : > { %v1115_v59 = vsub.f32 1.0, %v1114_v54  ;;  %v1111_v36 = vsel %vm1108_vm11, %v1110_v10, %v1106_v9 }
 0x60d   : > { %v1140_v8 = vor.u32 1.1754944e-38, %v1139_v60  ;;  %vm1138_vm1 = vcmp.eq.f32.partialorder %v1137_v1, 8.507059e+37  ;;  %v1112_v28 = vmul.f32 %v1957_v17, %v1111_v36 }
 0x60e   : > { %v1116_v2 = vmul.f32 %v1617_v51, %v1115_v59 }
 0x610   : > { %v1093_v55 = vpop.xlane.xlu1 %1092  ;;  %v1117_v13 = vadd.f32 %v1617_v51, %v1116_v2 }
 0x611   : > { %v1619_v56 = vpop.eup %1618  ;;  %v1097_v57 = vmax.f32 %v1093_v55, 1e-30 }
 0x612   : > { %v1129_v3 = vmul.f32 %v1619_v56, %v1096_v5  ;;  %vm1134_vm5 = vweird.f32 %v1619_v56  ;;  %v1121_v25 = vsel %vm1120_vm13, %v1617_v51, %v1117_v13 }
 0x613   : > { %1620 = vrcp.f32 %v1097_v57  ;;  %vm1135_vm9 = vmor %vm1133_vm7, %vm1134_vm5  ;;  %v1154_v22 = vand.u32 2147483648, %v1097_v57  ;;  %v1152_v26 = vand.u32 2147483647, %v1097_v57  ;;  %vm1148_vm14 = vweird.f32 %v1097_v57 }
 0x614   : > { %v1130_v24 = vsub.f32 1.0, %v1129_v3  ;;  %v1126_v37 = vsel %vm1123_vm15, %v1125_v29, %v1121_v25 }
 0x615   : > { %v1155_v12 = vor.u32 1.1754944e-38, %v1154_v22  ;;  %vm1153_vm4 = vcmp.eq.f32.partialorder %v1152_v26, 8.507059e+37  ;;  %v1127_v40 = vmul.f32 %v1961_v21, %v1126_v37 }
 0x616   : > { %v1131_v63 = vmul.f32 %v1619_v56, %v1130_v24 }
 0x618   : > { %v1132_v32 = vadd.f32 %v1619_v56, %v1131_v63 }
 0x619   : > { %v1621_v6 = vpop.eup %1620 }
 0x61a   : > { %v1136_v41 = vsel %vm1135_vm9, %v1619_v56, %v1132_v32  ;;  %v1144_v11 = vmul.f32 %v1621_v6, %v1097_v57  ;;  %vm1149_vm2 = vweird.f32 %v1621_v6 }
 0x61b   : > { %v1141_v14 = vsel %vm1138_vm1, %v1140_v8, %v1136_v41  ;;  %vm1150_vm3 = vmor %vm1148_vm14, %vm1149_vm2 }
 0x61c   : > { %v1145_v18 = vsub.f32 1.0, %v1144_v11  ;;  %v1142_v19 = vmul.f32 %v1965_v27, %v1141_v14 }
 0x61e   : > { %v1146_v23 = vmul.f32 %v1621_v6, %v1145_v18  ;;  %v1196_v35 = vmul.f32 %v1194_v30, %v1142_v19 }
 0x620   : > { %v1186_v33 = vpop.permute.xlu0 %1185  ;;  %v1147_v34 = vadd.f32 %v1621_v6, %v1146_v23 }
 0x621   : > { %v1188_v38 = vmul.f32 %v1186_v33, %v1112_v28  ;;  %v1189_v17 = vmul.f32 %v1186_v33, %v1127_v40 }
 0x622   : > { %v1151_v27 = vsel %vm1150_vm3, %v1621_v6, %v1147_v34 }
 0x623   : > { %v1198_v0 = vadd.f32 %v1196_v35, %v1188_v38  ;;  %v1156_v39 = vsel %vm1153_vm4, %v1155_v12, %v1151_v27 }
 0x624   : > { %v1157_v42 = vmul.f32 %v1969_v31, %v1156_v39 }
 0x625   : > { %vm1200_vm5 = vcmp.gt.f32.partialorder %v1198_v0, 0.0 }
 0x626   : > { %v1202_v43 = vsel %vm1200_vm5, %v1198_v0, -9e+15  ;;  %v1197_v44 = vmul.f32 %v1194_v30, %v1157_v42 }
 0x627   : > { %v1204_v45 = vsel %vm610_vm0, %v1202_v43, -inf }
 0x628   : > { %1205 = vmax.xlane.f32.xlu1 %v1204_v45  ;;  %v1199_v46 = vadd.f32 %v1197_v44, %v1189_v17 }
 0x62a   : > { %vm1201_vm6 = vcmp.gt.f32.partialorder %v1199_v46, 0.0 }
 0x62b   : > { %v1203_v47 = vsel %vm1201_vm6, %v1199_v46, -9e+15 }
 0x62c   : > { %v1207_v48 = vsel %vm610_vm0, %v1203_v47, -inf }
 0x630   : > { %1208 = vmax.xlane.f32.xlu1 %v1207_v48 }
 0x69b   : > { %v1206_v16 = vpop.xlane.xlu1 %1205 }
 0x69c   : > { %v1210_v7 = vsub.f32 %v1202_v43, %v1206_v16 }
 0x69e   : > { %v1212_v49 = vmul.f32 1.442695, %v1210_v7 }
 0x6a0   : > { %1622 = vpow2.f32 %v1212_v49 }
 0x6a3   : > { %v1209_v21 = vpop.xlane.xlu1 %1208 }
 0x6a4   : > { %v1211_v50 = vsub.f32 %v1203_v47, %v1209_v21 }
 0x6a6   : > { %v1623_v31 = vpop.eup %1622  ;;  %v1214_v5 = vmul.f32 1.442695, %v1211_v50 }
 0x6a7   : > { %v1216_v51 = vsel %vm610_vm0, %v1623_v31, 0.0 }
 0x6a8   : > { %1624 = vpow2.f32 %v1214_v5  ;;  %1217 = vadd.xlane.f32.xlu0 %v1216_v51 }
 0x6ae   : > { %v1625_v53 = vpop.eup %1624 }
 0x6af   : > { %v1219_v54 = vsel %vm610_vm0, %v1625_v53, 0.0 }
 0x6b0   : > { %1220 = vadd.xlane.f32.xlu1 %v1219_v54 }
 0x71b   : > { %v1218_v55 = vpop.xlane.xlu0 %1217 }
 0x71c   : > { %1626 = vrcp.f32 %v1218_v55  ;;  %v1233_v3 = vand.u32 2147483648, %v1218_v55  ;;  %v1231_v60 = vand.u32 2147483647, %v1218_v55  ;;  %vm1227_vm8 = vweird.f32 %v1218_v55 }
 0x71e   : > { %v1234_v63 = vor.u32 1.1754944e-38, %v1233_v3  ;;  %vm1232_vm10 = vcmp.eq.f32.partialorder %v1231_v60, 8.507059e+37 }
 0x722   : > { %v1627_v56 = vpop.eup %1626 }
 0x723   : > { %v1223_v57 = vmul.f32 %v1627_v56, %v1218_v55  ;;  %v1221_v58 = vpop.xlane.xlu1 %1220  ;;  %vm1228_vm7 = vweird.f32 %v1627_v56 }
 0x724   : > { %1628 = vrcp.f32 %v1221_v58  ;;  %vm1229_vm9 = vmor %vm1227_vm8, %vm1228_vm7  ;;  %v1248_v6 = vand.u32 2147483648, %v1221_v58  ;;  %v1246_v9 = vand.u32 2147483647, %v1221_v58  ;;  %vm1242_vm11 = vweird.f32 %v1221_v58 }
 0x725   : > { %v1224_v59 = vsub.f32 1.0, %v1223_v57 }
 0x726   : > { %v1249_v41 = vor.u32 1.1754944e-38, %v1248_v6  ;;  %vm1247_vm13 = vcmp.eq.f32.partialorder %v1246_v9, 8.507059e+37 }
 0x727   : > { %v1225_v24 = vmul.f32 %v1627_v56, %v1224_v59 }
 0x729   : > { %v1226_v61 = vadd.f32 %v1627_v56, %v1225_v24 }
 0x72a   : > { %v1629_v62 = vpop.eup %1628 }
 0x72b   : > { %v1230_v1 = vsel %vm1229_vm9, %v1627_v56, %v1226_v61  ;;  %v1238_v2 = vmul.f32 %v1629_v62, %v1221_v58  ;;  %vm1243_vm1 = vweird.f32 %v1629_v62 }
 0x72c   : > { %v1235_v20 = vsel %vm1232_vm10, %v1234_v63, %v1230_v1  ;;  %vm1244_vm12 = vmor %vm1242_vm11, %vm1243_vm1 }
 0x72d   : > { %v1239_v32 = vsub.f32 1.0, %v1238_v2  ;;  %v1236_v4 = vmul.f32 %v1623_v31, %v1235_v20 }
 0x72f   : > { %v1240_v8 = vmul.f32 %v1629_v62, %v1239_v32  ;;  %1499 = vmatmul.msk.f32.vlgmr.msrb.gmra.mxu0 %vm610_vm0, %v1236_v4 }
 0x731   : > { %v1241_v10 = vadd.f32 %v1629_v62, %v1240_v8 }
 0x733   : > { %v1245_v11 = vsel %vm1244_vm12, %v1629_v62, %v1241_v10 }
 0x734   : > { %v1250_v13 = vsel %vm1247_vm13, %v1249_v41, %v1245_v11 }
 0x735   : > { %v1251_v14 = vmul.f32 %v1625_v53, %v1250_v13 }
 0x737   : > { %1500 = vmatmul.msk.f32.gmra.mxu0 %vm610_vm0, %v1251_v14 }
 0x7ac   : > { %v1275_v15 = vpop.f32.mrf.mxu0 }
 0x7ad   : > { %1281 = vst [vmem:[%s538_s23] sm:$0xff] %v1275_v15 }
 0x7b4   : > { %v1278_v18 = vpop.f32.mrf.mxu0 }
 0x7b5   : > { %1282 = vst [vmem:[%s538_s23 + $0x8] sm:$0xff] %v1278_v18 }
 0x7b6   : > { %1657 = shalt.err (!%p1654_p3)
}
 0x7b7   : > { %s1696_s15 = smov 128   ;;  %s1697_s23 = smov 8  }
 0x7b8   : > { %1522 = dma.vmem_to_hbm [thread:$0]  (%p1801_p5), %s1297_s29, 256, %s1299_s18, %s1284_s19, %s1696_s15, %s1696_s15, %s1697_s23  }
 0x7b9 PF: > { %p1528_p4 = scmp.ge.s32.totalorder %s1692_s24, 2  ;;  %s1313_s26 = sand.u32 1, %s1680_s21  }
 0x7ba   : > { %s1314_s28 = scalar_lea.sflag [#allocation3], %s1313_s26 }
 0x7bb   : > { %p1525_p7 = pnand %p1528_p4, %p1805_p6 }
 0x7bd   : > { %p1526_p8 = pneg %p1525_p7 }
 0x7bf   : > { %1675 = dma.done.wait (%p1526_p8), %s1314_s28, 256  }
 0x7c0   : > { %1677 = vsyncadd (%p1526_p8), %s1314_s28, 4294967040  ;;  %s2050_s0 = sld [smem:[#allocation5_spill]]  ;;  %p22_p9 = scmp.ge.s32.totalorder %s1788_s27, 4  }
 0x7c1   : > { %s2051_s23 = sld [smem:[#allocation6_spill]]  ;;  %s2052_s21 = smov %s1684_s22 }
 0x7c2   : > { %s2054_s24 = smov %s1788_s27  ;;  %24 = sbr.rel (!%p22_p9) target bundleno = 6 (0x6), region = 133 }
 0x7c6   : > { %s2053_s22 = smov %s2050_s0 }
 0x7c7   :  { %1320 = vsyncpa [#allocation3], 1 }
 0x7c8   :  { %1322 = vsyncpa [#allocation3 + $0x1], 1 }

</bundles_post_ra>
